<compile_context>
chip_gen: v5e
topology: v5e:2x2
jax: 0.10.0
libtpu: 0.0.40
codegen_flags: <defaults>
</compile_context>

<pallas_src>
import functools

import jax
import jax.numpy as jnp
from jax.experimental import pallas as pl
from jax.experimental.pallas import tpu as pltpu

_LANE = 128
_TB_ALIGN = 16  # bf16 min tile is (16, 128): keep batch tiles 16-aligned.


def _round_up(x, m):
    return ((x + m - 1) // m) * m


def _pad2(a, rows, cols):
    r, c = a.shape
    if r == rows and c == cols:
        return a
    return jnp.pad(a, ((0, rows - r), (0, cols - c)))


def _apply_act(z, act):
    if act == "relu":
        return jnp.maximum(z, 0.0)
    if act == "sigmoid":
        return jax.nn.sigmoid(z)
    if act == "tanh":
        return jnp.tanh(z)
    if act is None:
        return z
    raise ValueError(f"unsupported activation: {act}")


def _fused_mlp_kernel(x_ref, *refs, n_layers, acts, compute_dtype):
    """refs = [W0, b0, W1, b1, ..., W_{L-1}, b_{L-1}, out].

    All layers run back-to-back on the current batch tile; activations stay in
    VMEM / vregs (no HBM round trips between layers).
    """
    h = x_ref[...].astype(compute_dtype)  # bf16 cast done in-kernel (VPU)
    pos = 0
    for li in range(n_layers):
        w = refs[pos][...]          # pre-cast bf16, N padded to 128
        b = refs[pos + 1][...]      # f32 (1, N_pad), broadcasts over rows
        pos += 2
        z = jnp.dot(h, w, preferred_element_type=jnp.float32) + b
        z = _apply_act(z, acts[li])
        h = z if li == n_layers - 1 else z.astype(compute_dtype)
    o_ref = refs[pos]
    o_ref[...] = h.astype(o_ref.dtype)


def _vmem_capacity_bytes():
    try:
        return int(pltpu.get_tpu_info().vmem_capacity_bytes)
    except Exception:
        return 64 << 20  # conservative (v7x per-TensorCore VMEM)


def mlp_forward_pallas(x, padded_params, dims, acts, *,
                       compute_dtype=jnp.bfloat16, tb_max=1024):
    """Fused MLP forward.

    x:             (B, input_size) f32 (concat already folded by the caller).
    padded_params: list of (W_padded, b_padded) stored once at init:
                   W: (K_pad_i, N_pad_i) compute_dtype, b: (1, N_pad_i) f32.
                   Layer 0's K dim stays at the true input width.
    dims:          logical (in, out) dims per layer (for flops / final slice).
    acts:          one activation name (or None) per layer.
    """
    B, d_in = x.shape
    n_layers = len(padded_params)
    out_dim = dims[-1][1]
    out_pad = padded_params[-1][0].shape[1]

    cd_bytes = jnp.dtype(compute_dtype).itemsize
    w_bytes = sum(int(w.size) * cd_bytes for (w, _) in padded_params)
    b_bytes = sum(int(b.size) * 4 for (_, b) in padded_params)
    max_pad = max(w.shape[1] for (w, _) in padded_params)

    vmem_cap = _vmem_capacity_bytes()
    vmem_budget = int(vmem_cap * 0.75)          # ~48 MiB on v7x, ~96 MiB on v5e/v6e
    resident = 2 * (w_bytes + b_bytes)          # conservative (double-buffer) bound

    def tile_bytes(tb):
        io = 2 * tb * d_in * 4 + 2 * tb * out_pad * 4
        inter = 2 * tb * max_pad * 4 + tb * max_pad * cd_bytes
        return io + inter

    # --- batch-tile selection ------------------------------------------------
    TB = min(tb_max, _round_up(B, _TB_ALIGN))
    # Ensure >= 2 grid steps when the batch allows, so the "parallel" axis can
    # shard across v7x's two TensorCores.
    if B >= 2 * _TB_ALIGN and _round_up(B, TB) // TB < 2:
        TB = _round_up(pl.cdiv(B, 2), _TB_ALIGN)
    while TB > _TB_ALIGN and resident + tile_bytes(TB) > vmem_budget:
        TB = max(_TB_ALIGN, _round_up(TB // 2, _TB_ALIGN))

    if resident + tile_bytes(TB) > vmem_budget:
        # TODO(synk): stream oversized layers over an N/K grid axis (or
        # pltpu.emit_pipeline) instead of falling back to plain XLA when the
        # resident weights exceed VMEM (only hit for very large hidden sizes).
        h = x
        for li, ((w, b), (_, do)) in enumerate(zip(padded_params, dims)):
            wf = w[:h.shape[1], :do].astype(jnp.float32)
            h = _apply_act(jnp.dot(h, wf) + b[0, :do], acts[li])
        return h

    Bp = _round_up(B, TB)
    xp = _pad2(x, Bp, d_in)  # batch-only pad; feature axis stays at true width

    kernel = functools.partial(
        _fused_mlp_kernel,
        n_layers=n_layers,
        acts=tuple(acts),
        compute_dtype=compute_dtype,
    )
    flat_params = [p for wb in padded_params for p in wb]

    flops = 2 * B * sum(di * do for (di, do) in dims)
    transcendentals = B * out_dim if acts[-1] in ("sigmoid", "tanh") else 0
    bytes_accessed = int(xp.size) * 4 + w_bytes + b_bytes + Bp * out_pad * 4
    vmem_limit = int(min(max(resident + tile_bytes(TB) + (4 << 20), 32 << 20),
                         vmem_cap - (4 << 20)))

    def build_specs(use_single_buffer):
        specs = [pl.BlockSpec((TB, d_in), lambda i: (i, 0))]
        for (w, b) in padded_params:
            if use_single_buffer:
                # Grid-invariant blocks: double-buffering them is pure VMEM waste.
                specs.append(pl.BlockSpec(w.shape, lambda i: (0, 0),
                                          pipeline_mode=pl.Buffered(1)))
                specs.append(pl.BlockSpec(b.shape, lambda i: (0, 0),
                                          pipeline_mode=pl.Buffered(1)))
            else:
                specs.append(pl.BlockSpec(w.shape, lambda i: (0, 0)))
                specs.append(pl.BlockSpec(b.shape, lambda i: (0, 0)))
        return specs

    def call(use_single_buffer):
        return pl.pallas_call(
            kernel,
            out_shape=jax.ShapeDtypeStruct((Bp, out_pad), jnp.float32),
            grid_spec=pltpu.PrefetchScalarGridSpec(
                num_scalar_prefetch=0,
                grid=(Bp // TB,),
                in_specs=build_specs(use_single_buffer),
                out_specs=pl.BlockSpec((TB, out_pad), lambda i: (i, 0)),
            ),
            compiler_params=pltpu.CompilerParams(
                dimension_semantics=("parallel",),
                vmem_limit_bytes=vmem_limit,
            ),
            cost_estimate=pl.CostEstimate(
                flops=flops,
                transcendentals=transcendentals,
                bytes_accessed=bytes_accessed,
            ),
        )(xp, *flat_params)

    use_single_buffer = hasattr(pl, "Buffered")
    try:
        out = call(use_single_buffer)
    except Exception:
        # Older JAX without Buffered(1) support: keep default double-buffering.
        out = call(False)

    return out[:B, :out_dim]


class MLP:
    """JAX/Pallas port of the PyTorch MLP (src/model/Solo.py)."""

    def __init__(self, input_size, hidden_sizes, output_size=1, activation=None,
                 key=jax.random.PRNGKey(42), compute_dtype=jnp.bfloat16):
        self.hidden_sizes = list(hidden_sizes)
        self.activation = activation
        self.input_size = input_size
        self.compute_dtype = compute_dtype

        # Layer dims exactly as in the PyTorch __init__.
        if len(self.hidden_sizes) != 0:
            dims = [(input_size, self.hidden_sizes[0])]
            for i in range(len(self.hidden_sizes) - 1):
                dims.append((self.hidden_sizes[i], self.hidden_sizes[i + 1]))
            dims.append((self.hidden_sizes[-1], output_size))
        else:
            dims = [(input_size, output_size)]
        self.dims = dims

        # Deterministic PyTorch-style init: U(-1/sqrt(fan_in), 1/sqrt(fan_in)).
        # Weights stored pre-transposed as (in, out) so the kernel does X @ W.
        self.params = []
        for (fan_in, fan_out) in dims:
            key, wk, bk = jax.random.split(key, 3)
            bound = 1.0 / (fan_in ** 0.5)
            w = jax.random.uniform(wk, (fan_in, fan_out), jnp.float32,
                                   minval=-bound, maxval=bound)
            b = jax.random.uniform(bk, (fan_out,), jnp.float32,
                                   minval=-bound, maxval=bound)
            self.params.append((w, b))

        # Pre-pad / pre-cast ONCE: output (N) dims padded to 128 lanes, the K
        # dim of layers > 0 padded to the previous layer's padded width (zero
        # rows contribute nothing), layer-0 K kept at the true input width so
        # the input x needs no lane padding at all.
        self.padded_params = []
        prev_pad = input_size
        for (w, b) in self.params:
            n_pad = _round_up(w.shape[1], _LANE)
            wp = _pad2(w, prev_pad, n_pad).astype(compute_dtype)
            bp = _pad2(b.reshape(1, -1), 1, n_pad).astype(jnp.float32)
            self.padded_params.append((wp, bp))
            prev_pad = n_pad

    def __call__(self, key_X):
        key_in, X = key_X
        # Fold the (key, X) concat here: single K matmul, one input DMA stream.
        if key_in is not None:
            X = jnp.concatenate([key_in, X], axis=1)
        n_layers = len(self.params)

        # Activation schedule: hidden layers use relu, final layer uses
        # self.activation (strings handled in-kernel, callables outside).
        if self.activation in ("sigmoid", "tanh", "relu", None):
            final_act = self.activation
            post_fn = None
        elif callable(self.activation):
            final_act = None
            post_fn = self.activation  # TODO(synk): arbitrary callables run outside the kernel.
        else:
            raise AssertionError("unknown activation")
        acts = ["relu"] * (n_layers - 1) + [final_act]

        out = mlp_forward_pallas(X, self.padded_params, self.dims, acts,
                                 compute_dtype=self.compute_dtype)
        if post_fn is not None:
            out = post_fn(out)
        return out


def _ref_forward(mlp, key_X):
    """Pure-JAX f32 reference matching the PyTorch forward."""
    if key_X[0] is not None:
        X = jnp.concatenate(key_X, axis=1)
    else:
        X = key_X[1]
    n = len(mlp.params)
    out = X
    if n >= 2:
        w, b = mlp.params[0]
        out = jnp.maximum(out @ w + b, 0.0)
        for (w, b) in mlp.params[1:-1]:
            out = jnp.maximum(out @ w + b, 0.0)
    w, b = mlp.params[-1]
    out = out @ w + b
    if mlp.activation == "sigmoid":
        out = jax.nn.sigmoid(out)
    elif mlp.activation == "tanh":
        out = jnp.tanh(out)
    elif mlp.activation == "relu":
        out = jnp.maximum(out, 0.0)
    elif callable(mlp.activation):
        out = mlp.activation(out)
    return out


if __name__ == "__main__":
    # Small, deterministic example: key features (B, 12) + X features (B, 20)
    # -> logical concat width 32 -> hidden [64, 32] -> output 1 (sigmoid).
    B = 8
    k0 = jax.random.PRNGKey(0)
    k_key, k_x = jax.random.split(k0)
    key_feats = jax.random.normal(k_key, (B, 12), jnp.float32)
    x_feats = jax.random.normal(k_x, (B, 20), jnp.float32)

    mlp = MLP(input_size=32, hidden_sizes=[64, 32], output_size=1,
              activation="sigmoid")
    out = jax.block_until_ready(mlp((key_feats, x_feats)))
    assert out.shape == (B, 1)
    ref = _ref_forward(mlp, (key_feats, x_feats))
    err = float(jnp.max(jnp.abs(out - ref)))
    assert err < 5e-2, f"mismatch vs f32 reference: {err}"

    # "key is None" branch + single-layer (no hidden) case.
    mlp_single = MLP(input_size=20, hidden_sizes=[], output_size=1, activation=None)
    out2 = jax.block_until_ready(mlp_single((None, x_feats)))
    assert out2.shape == (B, 1)
    ref2 = _ref_forward(mlp_single, (None, x_feats))
    err2 = float(jnp.max(jnp.abs(out2 - ref2)))
    assert err2 < 5e-2, f"mismatch vs f32 reference: {err2}"

    # Larger batch to exercise batch padding + >= 2 parallel grid steps.
    B3 = 40
    k_key3, k_x3 = jax.random.split(jax.random.PRNGKey(3))
    key3 = jax.random.normal(k_key3, (B3, 12), jnp.float32)
    x3 = jax.random.normal(k_x3, (B3, 20), jnp.float32)
    out3 = jax.block_until_ready(mlp((key3, x3)))
    assert out3.shape == (B3, 1)
    ref3 = _ref_forward(mlp, (key3, x3))
    err3 = float(jnp.max(jnp.abs(out3 - ref3)))
    assert err3 < 5e-2, f"mismatch vs f32 reference: {err3}"

    print("KERNEL_OK")
</pallas_src>

<mosaic_0001>
module attributes {stable_mosaic.version = 11 : i64} {
  func.func @_fused_mlp_kernel(%arg0: i32, %arg1: memref<16x32xf32, #tpu.memory_space<vmem>>, %arg2: memref<32x128xbf16, #tpu.memory_space<vmem>>, %arg3: memref<1x128xf32, #tpu.memory_space<vmem>>, %arg4: memref<128x128xbf16, #tpu.memory_space<vmem>>, %arg5: memref<1x128xf32, #tpu.memory_space<vmem>>, %arg6: memref<128x128xbf16, #tpu.memory_space<vmem>>, %arg7: memref<1x128xf32, #tpu.memory_space<vmem>>, %arg8: memref<16x128xf32, #tpu.memory_space<vmem>>) attributes {dimension_semantics = [#tpu.dimension_semantics<parallel>], iteration_bounds = array<i64: 1>, scalar_prefetch = 0 : i64, scratch_operands = 0 : i64, tpu.core_type = #tpu.core_type<tc>, window_params = [{transform_indices = @transform_0, window_bounds = array<i64: 16, 32>}, {pipeline_mode = #tpu.pipeline_mode<synchronous>, transform_indices = @transform_1, window_bounds = array<i64: 32, 128>}, {pipeline_mode = #tpu.pipeline_mode<synchronous>, transform_indices = @transform_2, window_bounds = array<i64: 1, 128>}, {pipeline_mode = #tpu.pipeline_mode<synchronous>, transform_indices = @transform_3, window_bounds = array<i64: 128, 128>}, {pipeline_mode = #tpu.pipeline_mode<synchronous>, transform_indices = @transform_4, window_bounds = array<i64: 1, 128>}, {pipeline_mode = #tpu.pipeline_mode<synchronous>, transform_indices = @transform_5, window_bounds = array<i64: 128, 128>}, {pipeline_mode = #tpu.pipeline_mode<synchronous>, transform_indices = @transform_6, window_bounds = array<i64: 1, 128>}, {transform_indices = @transform_7, window_bounds = array<i64: 16, 128>}]} {
    %c0 = arith.constant 0 : index
    %c0_0 = arith.constant 0 : index
    %0 = vector.load %arg1[%c0, %c0_0] : memref<16x32xf32, #tpu.memory_space<vmem>>, vector<16x32xf32>
    %1 = arith.truncf %0 : vector<16x32xf32> to vector<16x32xbf16>
    %c0_1 = arith.constant 0 : index
    %c0_2 = arith.constant 0 : index
    %2 = vector.load %arg2[%c0_1, %c0_2] : memref<32x128xbf16, #tpu.memory_space<vmem>>, vector<32x128xbf16>
    %c0_3 = arith.constant 0 : index
    %c0_4 = arith.constant 0 : index
    %3 = vector.load %arg3[%c0_3, %c0_4] : memref<1x128xf32, #tpu.memory_space<vmem>>, vector<1x128xf32>
    %cst = arith.constant dense<0.000000e+00> : vector<16x128xf32>
    %4 = tpu.matmul %1, %2, %cst {dimension_numbers = #tpu.dot_dimension_numbers<[1], [0], [0], [1], [0, 0, 1, 1], [], []>} : vector<16x32xbf16>, vector<32x128xbf16>, vector<16x128xf32> -> vector<16x128xf32>
    %5 = vector.broadcast %3 : vector<1x128xf32> to vector<16x128xf32>
    %6 = arith.addf %4, %5 : vector<16x128xf32>
    %cst_5 = arith.constant 0.000000e+00 : f32
    %7 = vector.broadcast %cst_5 : f32 to vector<16x128xf32>
    %8 = arith.maximumf %6, %7 : vector<16x128xf32>
    %9 = arith.truncf %8 : vector<16x128xf32> to vector<16x128xbf16>
    %c0_6 = arith.constant 0 : index
    %c0_7 = arith.constant 0 : index
    %10 = vector.load %arg4[%c0_6, %c0_7] : memref<128x128xbf16, #tpu.memory_space<vmem>>, vector<128x128xbf16>
    %c0_8 = arith.constant 0 : index
    %c0_9 = arith.constant 0 : index
    %11 = vector.load %arg5[%c0_8, %c0_9] : memref<1x128xf32, #tpu.memory_space<vmem>>, vector<1x128xf32>
    %cst_10 = arith.constant dense<0.000000e+00> : vector<16x128xf32>
    %12 = tpu.matmul %9, %10, %cst_10 {dimension_numbers = #tpu.dot_dimension_numbers<[1], [0], [0], [1], [0, 0, 1, 1], [], []>} : vector<16x128xbf16>, vector<128x128xbf16>, vector<16x128xf32> -> vector<16x128xf32>
    %13 = vector.broadcast %11 : vector<1x128xf32> to vector<16x128xf32>
    %14 = arith.addf %12, %13 : vector<16x128xf32>
    %cst_11 = arith.constant 0.000000e+00 : f32
    %15 = vector.broadcast %cst_11 : f32 to vector<16x128xf32>
    %16 = arith.maximumf %14, %15 : vector<16x128xf32>
    %17 = arith.truncf %16 : vector<16x128xf32> to vector<16x128xbf16>
    %c0_12 = arith.constant 0 : index
    %c0_13 = arith.constant 0 : index
    %18 = vector.load %arg6[%c0_12, %c0_13] : memref<128x128xbf16, #tpu.memory_space<vmem>>, vector<128x128xbf16>
    %c0_14 = arith.constant 0 : index
    %c0_15 = arith.constant 0 : index
    %19 = vector.load %arg7[%c0_14, %c0_15] : memref<1x128xf32, #tpu.memory_space<vmem>>, vector<1x128xf32>
    %cst_16 = arith.constant dense<0.000000e+00> : vector<16x128xf32>
    %20 = tpu.matmul %17, %18, %cst_16 {dimension_numbers = #tpu.dot_dimension_numbers<[1], [0], [0], [1], [0, 0, 1, 1], [], []>} : vector<16x128xbf16>, vector<128x128xbf16>, vector<16x128xf32> -> vector<16x128xf32>
    %21 = vector.broadcast %19 : vector<1x128xf32> to vector<16x128xf32>
    %22 = arith.addf %20, %21 : vector<16x128xf32>
    %23 = arith.negf %22 : vector<16x128xf32>
    %24 = math.exp %23 : vector<16x128xf32>
    %cst_17 = arith.constant 1.000000e+00 : f32
    %25 = vector.broadcast %cst_17 : f32 to vector<16x128xf32>
    %26 = arith.addf %25, %24 : vector<16x128xf32>
    %27 = arith.divf %25, %26 : vector<16x128xf32>
    %c0_18 = arith.constant 0 : index
    %c0_19 = arith.constant 0 : index
    %28 = vector.load %arg8[%c0_18, %c0_19] : memref<16x128xf32, #tpu.memory_space<vmem>>, vector<16x128xf32>
    tpu.vector_store %arg8[%c0_18, %c0_19], %27 {strides = array<i32>} : memref<16x128xf32, #tpu.memory_space<vmem>>, vector<16x128xf32>,
    return
  }
  func.func @transform_0(%arg0: i32) -> (i32, i32) {
    %c0_i32 = arith.constant 0 : i32
    %c0_i32_0 = arith.constant 0 : i32
    return %arg0, %c0_i32 : i32, i32
  }
  func.func @transform_1(%arg0: i32) -> (i32, i32) {
    %c0_i32 = arith.constant 0 : i32
    %c0_i32_0 = arith.constant 0 : i32
    %c0_i32_1 = arith.constant 0 : i32
    return %c0_i32, %c0_i32_0 : i32, i32
  }
  func.func @transform_2(%arg0: i32) -> (i32, i32) {
    %c0_i32 = arith.constant 0 : i32
    %c0_i32_0 = arith.constant 0 : i32
    %c0_i32_1 = arith.constant 0 : i32
    return %c0_i32, %c0_i32_0 : i32, i32
  }
  func.func @transform_3(%arg0: i32) -> (i32, i32) {
    %c0_i32 = arith.constant 0 : i32
    %c0_i32_0 = arith.constant 0 : i32
    %c0_i32_1 = arith.constant 0 : i32
    return %c0_i32, %c0_i32_0 : i32, i32
  }
  func.func @transform_4(%arg0: i32) -> (i32, i32) {
    %c0_i32 = arith.constant 0 : i32
    %c0_i32_0 = arith.constant 0 : i32
    %c0_i32_1 = arith.constant 0 : i32
    return %c0_i32, %c0_i32_0 : i32, i32
  }
  func.func @transform_5(%arg0: i32) -> (i32, i32) {
    %c0_i32 = arith.constant 0 : i32
    %c0_i32_0 = arith.constant 0 : i32
    %c0_i32_1 = arith.constant 0 : i32
    return %c0_i32, %c0_i32_0 : i32, i32
  }
  func.func @transform_6(%arg0: i32) -> (i32, i32) {
    %c0_i32 = arith.constant 0 : i32
    %c0_i32_0 = arith.constant 0 : i32
    %c0_i32_1 = arith.constant 0 : i32
    return %c0_i32, %c0_i32_0 : i32, i32
  }
  func.func @transform_7(%arg0: i32) -> (i32, i32) {
    %c0_i32 = arith.constant 0 : i32
    %c0_i32_0 = arith.constant 0 : i32
    return %arg0, %c0_i32 : i32, i32
  }
}

module attributes {stable_mosaic.version = 11 : i64} {
  func.func @_fused_mlp_kernel(%arg0: i32, %arg1: memref<16x32xf32, #tpu.memory_space<vmem>>, %arg2: memref<32x128xbf16, #tpu.memory_space<vmem>>, %arg3: memref<1x128xf32, #tpu.memory_space<vmem>>, %arg4: memref<128x128xbf16, #tpu.memory_space<vmem>>, %arg5: memref<1x128xf32, #tpu.memory_space<vmem>>, %arg6: memref<128x128xbf16, #tpu.memory_space<vmem>>, %arg7: memref<1x128xf32, #tpu.memory_space<vmem>>, %arg8: memref<16x128xf32, #tpu.memory_space<vmem>>) attributes {dimension_semantics = [#tpu.dimension_semantics<parallel>], iteration_bounds = array<i64: 1>, scalar_prefetch = 0 : i64, scratch_operands = 0 : i64, tpu.core_type = #tpu.core_type<tc>, window_params = [{transform_indices = @transform_0, window_bounds = array<i64: 16, 32>}, {pipeline_mode = #tpu.pipeline_mode<synchronous>, transform_indices = @transform_1, window_bounds = array<i64: 32, 128>}, {pipeline_mode = #tpu.pipeline_mode<synchronous>, transform_indices = @transform_2, window_bounds = array<i64: 1, 128>}, {pipeline_mode = #tpu.pipeline_mode<synchronous>, transform_indices = @transform_3, window_bounds = array<i64: 128, 128>}, {pipeline_mode = #tpu.pipeline_mode<synchronous>, transform_indices = @transform_4, window_bounds = array<i64: 1, 128>}, {pipeline_mode = #tpu.pipeline_mode<synchronous>, transform_indices = @transform_5, window_bounds = array<i64: 128, 128>}, {pipeline_mode = #tpu.pipeline_mode<synchronous>, transform_indices = @transform_6, window_bounds = array<i64: 1, 128>}, {transform_indices = @transform_7, window_bounds = array<i64: 16, 128>}]} {
    %c0 = arith.constant 0 : index
    %c0_0 = arith.constant 0 : index
    %0 = vector.load %arg1[%c0, %c0_0] : memref<16x32xf32, #tpu.memory_space<vmem>>, vector<16x32xf32>
    %1 = arith.truncf %0 : vector<16x32xf32> to vector<16x32xbf16>
    %c0_1 = arith.constant 0 : index
    %c0_2 = arith.constant 0 : index
    %2 = vector.load %arg2[%c0_1, %c0_2] : memref<32x128xbf16, #tpu.memory_space<vmem>>, vector<32x128xbf16>
    %c0_3 = arith.constant 0 : index
    %c0_4 = arith.constant 0 : index
    %3 = vector.load %arg3[%c0_3, %c0_4] : memref<1x128xf32, #tpu.memory_space<vmem>>, vector<1x128xf32>
    %cst = arith.constant dense<0.000000e+00> : vector<16x128xf32>
    %4 = tpu.matmul %1, %2, %cst {dimension_numbers = #tpu.dot_dimension_numbers<[1], [0], [0], [1], [0, 0, 1, 1], [], []>} : vector<16x32xbf16>, vector<32x128xbf16>, vector<16x128xf32> -> vector<16x128xf32>
    %5 = vector.broadcast %3 : vector<1x128xf32> to vector<16x128xf32>
    %6 = arith.addf %4, %5 : vector<16x128xf32>
    %cst_5 = arith.constant 0.000000e+00 : f32
    %7 = vector.broadcast %cst_5 : f32 to vector<16x128xf32>
    %8 = arith.maximumf %6, %7 : vector<16x128xf32>
    %9 = arith.truncf %8 : vector<16x128xf32> to vector<16x128xbf16>
    %c0_6 = arith.constant 0 : index
    %c0_7 = arith.constant 0 : index
    %10 = vector.load %arg4[%c0_6, %c0_7] : memref<128x128xbf16, #tpu.memory_space<vmem>>, vector<128x128xbf16>
    %c0_8 = arith.constant 0 : index
    %c0_9 = arith.constant 0 : index
    %11 = vector.load %arg5[%c0_8, %c0_9] : memref<1x128xf32, #tpu.memory_space<vmem>>, vector<1x128xf32>
    %cst_10 = arith.constant dense<0.000000e+00> : vector<16x128xf32>
    %12 = tpu.matmul %9, %10, %cst_10 {dimension_numbers = #tpu.dot_dimension_numbers<[1], [0], [0], [1], [0, 0, 1, 1], [], []>} : vector<16x128xbf16>, vector<128x128xbf16>, vector<16x128xf32> -> vector<16x128xf32>
    %13 = vector.broadcast %11 : vector<1x128xf32> to vector<16x128xf32>
    %14 = arith.addf %12, %13 : vector<16x128xf32>
    %cst_11 = arith.constant 0.000000e+00 : f32
    %15 = vector.broadcast %cst_11 : f32 to vector<16x128xf32>
    %16 = arith.maximumf %14, %15 : vector<16x128xf32>
    %17 = arith.truncf %16 : vector<16x128xf32> to vector<16x128xbf16>
    %c0_12 = arith.constant 0 : index
    %c0_13 = arith.constant 0 : index
    %18 = vector.load %arg6[%c0_12, %c0_13] : memref<128x128xbf16, #tpu.memory_space<vmem>>, vector<128x128xbf16>
    %c0_14 = arith.constant 0 : index
    %c0_15 = arith.constant 0 : index
    %19 = vector.load %arg7[%c0_14, %c0_15] : memref<1x128xf32, #tpu.memory_space<vmem>>, vector<1x128xf32>
    %cst_16 = arith.constant dense<0.000000e+00> : vector<16x128xf32>
    %20 = tpu.matmul %17, %18, %cst_16 {dimension_numbers = #tpu.dot_dimension_numbers<[1], [0], [0], [1], [0, 0, 1, 1], [], []>} : vector<16x128xbf16>, vector<128x128xbf16>, vector<16x128xf32> -> vector<16x128xf32>
    %21 = vector.broadcast %19 : vector<1x128xf32> to vector<16x128xf32>
    %22 = arith.addf %20, %21 : vector<16x128xf32>
    %23 = arith.negf %22 : vector<16x128xf32>
    %24 = math.exp %23 : vector<16x128xf32>
    %cst_17 = arith.constant 1.000000e+00 : f32
    %25 = vector.broadcast %cst_17 : f32 to vector<16x128xf32>
    %26 = arith.addf %25, %24 : vector<16x128xf32>
    %27 = arith.divf %25, %26 : vector<16x128xf32>
    %c0_18 = arith.constant 0 : index
    %c0_19 = arith.constant 0 : index
    %28 = vector.load %arg8[%c0_18, %c0_19] : memref<16x128xf32, #tpu.memory_space<vmem>>, vector<16x128xf32>
    tpu.vector_store %arg8[%c0_18, %c0_19], %27 {strides = array<i32>} : memref<16x128xf32, #tpu.memory_space<vmem>>, vector<16x128xf32>,
    return
  }
  func.func @transform_0(%arg0: i32) -> (i32, i32) {
    %c0_i32 = arith.constant 0 : i32
    %c0_i32_0 = arith.constant 0 : i32
    return %arg0, %c0_i32 : i32, i32
  }
  func.func @transform_1(%arg0: i32) -> (i32, i32) {
    %c0_i32 = arith.constant 0 : i32
    %c0_i32_0 = arith.constant 0 : i32
    %c0_i32_1 = arith.constant 0 : i32
    return %c0_i32, %c0_i32_0 : i32, i32
  }
  func.func @transform_2(%arg0: i32) -> (i32, i32) {
    %c0_i32 = arith.constant 0 : i32
    %c0_i32_0 = arith.constant 0 : i32
    %c0_i32_1 = arith.constant 0 : i32
    return %c0_i32, %c0_i32_0 : i32, i32
  }
  func.func @transform_3(%arg0: i32) -> (i32, i32) {
    %c0_i32 = arith.constant 0 : i32
    %c0_i32_0 = arith.constant 0 : i32
    %c0_i32_1 = arith.constant 0 : i32
    return %c0_i32, %c0_i32_0 : i32, i32
  }
  func.func @transform_4(%arg0: i32) -> (i32, i32) {
    %c0_i32 = arith.constant 0 : i32
    %c0_i32_0 = arith.constant 0 : i32
    %c0_i32_1 = arith.constant 0 : i32
    return %c0_i32, %c0_i32_0 : i32, i32
  }
  func.func @transform_5(%arg0: i32) -> (i32, i32) {
    %c0_i32 = arith.constant 0 : i32
    %c0_i32_0 = arith.constant 0 : i32
    %c0_i32_1 = arith.constant 0 : i32
    return %c0_i32, %c0_i32_0 : i32, i32
  }
  func.func @transform_6(%arg0: i32) -> (i32, i32) {
    %c0_i32 = arith.constant 0 : i32
    %c0_i32_0 = arith.constant 0 : i32
    %c0_i32_1 = arith.constant 0 : i32
    return %c0_i32, %c0_i32_0 : i32, i32
  }
  func.func @transform_7(%arg0: i32) -> (i32, i32) {
    %c0_i32 = arith.constant 0 : i32
    %c0_i32_0 = arith.constant 0 : i32
    return %arg0, %c0_i32 : i32, i32
  }
}

</mosaic_0001>

<bundles_post_ra>
// kernel: tpu_custom_call.1
= control target key start
LH: loop header
LB: loop body
LE: loop exit
PB: predicated region body
PF: predicated region fallthrough
CT: control target
= control target key end

     0   :  { %12 = vsyncpa [#allocation3], 0  ;;  %s683_s0 = inlined_call_operand.hbm [shape: f32[16,32], index: 0, kind: input, shape index: {}]   ;;  %s684_s1 = inlined_call_operand.hbm [shape: bf16[32,128], index: 1, kind: input, shape index: {}]   ;;  %s685_s2 = inlined_call_operand.vmem [shape: f32[1,128], index: 2, kind: input, shape index: {}]   ;;  %s686_s3 = inlined_call_operand.hbm [shape: bf16[128,128], index: 3, kind: input, shape index: {}]   ;;  %s687_s4 = inlined_call_operand.vmem [shape: f32[1,128], index: 4, kind: input, shape index: {}]   ;;  %s688_s5 = inlined_call_operand.hbm [shape: bf16[128,128], index: 5, kind: input, shape index: {}]   ;;  %s689_s6 = inlined_call_operand.vmem [shape: f32[1,128], index: 6, kind: input, shape index: {}]   ;;  %s690_s7 = inlined_call_operand.hbm [shape: f32[16,128], index: 7, kind: output, shape index: {}]  }
   0x1   :  { %13 = vsyncpa [#allocation6], 0 }
   0x2   :  { %14 = vsyncpa [#allocation9], 0  ;;  %s33_s26 = sshll.u32 %s684_s1, 4  ;;  %s34_s26 = int_to_ptr.hbm [resolvable:$true] %s33_s26 }
   0x3   :  { %15 = vsyncpa [#allocation4], 0  ;;  %s604_s27 = smov [#allocation5]   ;;  %s20_s8 = sshll.u32 %s683_s0, 4  ;;  %s21_s8 = int_to_ptr.hbm [resolvable:$true] %s20_s8 }
   0x4   :  { %s35_s28 = sshll.u32 %s604_s27, 4  ;;  %s605_s9 = smov 64   ;;  %s36_s28 = int_to_ptr.vmem [resolvable:$true] %s35_s28 }
   0x5   :  { %s606_s10 = smov 4   ;;  %s607_s11 = smov [#allocation2]  }
   0x6   :  { %41 = dma.hbm_to_vmem [thread:$0]  %s34_s26, 256, %s36_s28, [#allocation6], %s605_s9, %s605_s9, %s606_s10  }
   0x7   :  { %s22_s12 = sshll.u32 %s607_s11, 4  ;;  %s608_s13 = smov 128   ;;  %s23_s12 = int_to_ptr.vmem [resolvable:$true] %s22_s12 }
   0x8   :  { %s609_s14 = smov 8   ;;  %s48_s16 = sshll.u32 %s686_s3, 4  ;;  %s49_s16 = int_to_ptr.hbm [resolvable:$true] %s48_s16 }
   0x9   :  { %28 = dma.hbm_to_vmem [thread:$0]  %s21_s8, 256, %s23_s12, [#allocation3], %s608_s13, %s608_s13, %s609_s14  }
   0xa   :  { %s610_s17 = smov [#allocation7]   ;;  %s63_s20 = sshll.u32 %s688_s5, 4  ;;  %s64_s20 = int_to_ptr.hbm [resolvable:$true] %s63_s20 }
   0xb   :  { %s50_s0 = sshll.u32 %s610_s17, 4  ;;  %s611_s21 = smov [#allocation8]   ;;  %s51_s0 = int_to_ptr.vmem [resolvable:$true] %s50_s0 }
   0xc   :  { %56 = dma.hbm_to_vmem [thread:$0]  %s49_s16, 1024, %s51_s0, [#allocation6], %s605_s9, %s605_s9, %s606_s10  }
   0xd   :  { %s65_s22 = sshll.u32 %s611_s21, 4  ;;  %s66_s22 = int_to_ptr.vmem [resolvable:$true] %s65_s22 }
   0xe   :  { %71 = dma.hbm_to_vmem [thread:$0]  %s64_s20, 1024, %s66_s22, [#allocation9], %s605_s9, %s605_s9, %s606_s10  }
   0xf   :  { %596 = dma.done.wait [#allocation3], 256  }
  0x10   :  { %597 = vsyncadd [#allocation3], 4294967040 }
  0x11   :  { %598 = dma.done.wait [#allocation6], 1280  }
  0x12   :  { %599 = vsyncadd [#allocation6], 4294966016 }
  0x13   :  { %600 = dma.done.wait [#allocation9], 1024  }
  0x14   :  { %601 = vsyncadd [#allocation9], 4294966272  ;;  %v439_v0 = vld [vmem:[#allocation5 + $0x8] sm:$0xff]  ;;  %v438_v1 = vld [vmem:[#allocation5] sm:$0xff]  ;;  %vm114_vm0 = vcmask 261120   ;;  %s348_s28 = sshll.u32 %s690_s7, 4  ;;  %s349_s28 = int_to_ptr.hbm [resolvable:$true] %s348_s28 }
  0x15   :  { %v447_v2 = vld [vmem:[#allocation7 + $0x38] sm:$0xff]  ;;  %124 = vmatpush.bf16.msra.mxu0 %v439_v0  ;;  %v91_v3 = vld [vmem:[#allocation2] sm:$0xff]  ;;  %v92_v4 = vld [vmem:[#allocation2 + $0x8] sm:$0xff] }
  0x16   :  { %203 = vmatpush.bf16.msra.mxu1 %v447_v2  ;;  %v446_v5 = vld [vmem:[#allocation7 + $0x30] sm:$0xff]  ;;  %v93_v6 = vpack.c.bf16 %v92_v4, %v91_v3  ;;  %v445_v7 = vld [vmem:[#allocation7 + $0x28] sm:$0xff]  ;;  %v444_v8 = vld [vmem:[#allocation7 + $0x20] sm:$0xff] }
  0x17   :  { %v443_v9 = vld [vmem:[#allocation7 + $0x18] sm:$0xff]  ;;  %v442_v10 = vld [vmem:[#allocation7 + $0x10] sm:$0xff]  ;;  %v441_v11 = vld [vmem:[#allocation7 + $0x8] sm:$0xff] }
  0x18   :  { %v440_v12 = vld [vmem:[#allocation7] sm:$0xff]  ;;  %v455_v13 = vld [vmem:[#allocation8 + $0x38] sm:$0xff]  ;;  %v454_v14 = vld [vmem:[#allocation8 + $0x30] sm:$0xff] }
  0x19   :  { %125 = vmatpush.bf16.msra.mxu0 %v438_v1  ;;  %288 = vmatpush.bf16.msra.mxu2 %v455_v13  ;;  %v453_v15 = vld [vmem:[#allocation8 + $0x28] sm:$0xff]  ;;  %v452_v16 = vld [vmem:[#allocation8 + $0x20] sm:$0xff]  ;;  %v451_v25 = vld [vmem:[#allocation8 + $0x18] sm:$0xff] }
  0x1a   :  { %204 = vmatpush.bf16.msra.mxu1 %v446_v5  ;;  %v465_v18 = vld [vmem:[%s685_s2] ss:$0 sm:$0xff]  ;;  %v450_v26 = vld [vmem:[#allocation8 + $0x10] sm:$0xff]  ;;  %v449_v27 = vld [vmem:[#allocation8 + $0x8] sm:$0xff] }
  0x1b   :  { %v448_v28 = vld [vmem:[#allocation8] sm:$0xff] }
  0x1c   :  { %371 = vmatmul.msk.bf16.vlgmr.msra.gmra.mxu0 %vm114_vm0, %v93_v6  ;;  %v466_v30 = vld [vmem:[%s687_s4] ss:$0 sm:$0xff]  ;;  %s612_s4 = smov [#allocation10]  }
  0x1d   :  { %289 = vmatpush.bf16.msra.mxu2 %v454_v14  ;;  %v467_v37 = vld [vmem:[%s689_s6] ss:$0 sm:$0xff]  ;;  %s346_s6 = sshll.u32 %s612_s4, 4  ;;  %s347_s6 = int_to_ptr.vmem [resolvable:$true] %s346_s6 }
  0x1e   :  { %205 = vmatpush.bf16.msra.mxu1 %v445_v7 }
  0x21   :  { %290 = vmatpush.bf16.msra.mxu2 %v453_v15 }
  0x22   :  { %206 = vmatpush.bf16.msra.mxu1 %v444_v8 }
  0x25   :  { %291 = vmatpush.bf16.msra.mxu2 %v452_v16 }
  0x26   :  { %207 = vmatpush.bf16.msra.mxu1 %v443_v9 }
  0x29   :  { %292 = vmatpush.bf16.msra.mxu2 %v451_v25 }
  0x2a   :  { %208 = vmatpush.bf16.msra.mxu1 %v442_v10 }
  0x2d   :  { %293 = vmatpush.bf16.msra.mxu2 %v450_v26 }
  0x2e   :  { %209 = vmatpush.bf16.msra.mxu1 %v441_v11 }
  0x31   :  { %294 = vmatpush.bf16.msra.mxu2 %v449_v27 }
  0x32   :  { %210 = vmatpush.bf16.msra.mxu1 %v440_v12 }
  0x35   :  { %295 = vmatpush.bf16.msra.mxu2 %v448_v28 }
  0x99   :  { %v127_v17 = vpop.f32.mrf.mxu0 }
  0x9a   :  { %v128_v19 = vadd.f32 %v465_v18, %v127_v17 }
  0x9c   :  { %v132_v22 = vmax.f32 %v128_v19, 0.0 }
  0xa1   :  { %v129_v20 = vpop.f32.mrf.mxu0 }
  0xa2   :  { %v130_v21 = vadd.f32 %v465_v18, %v129_v20 }
  0xa4   :  { %v133_v23 = vmax.f32 %v130_v21, 0.0 }
  0xa6   :  { %v134_v24 = vpack.c.bf16 %v133_v23, %v132_v22 }
  0xa8   :  { %211 = vmatmul.bf16.vlgmr.msra.gmra.mxu1 %v134_v24 }
 0x125   :  { %v212_v29 = vpop.f32.mrf.mxu1 }
 0x126   :  { %v213_v31 = vadd.f32 %v466_v30, %v212_v29 }
 0x128   :  { %v217_v34 = vmax.f32 %v213_v31, 0.0 }
 0x12d   :  { %v214_v32 = vpop.f32.mrf.mxu1 }
 0x12e   :  { %v215_v33 = vadd.f32 %v466_v30, %v214_v32 }
 0x130   :  { %v218_v35 = vmax.f32 %v215_v33, 0.0 }
 0x132   :  { %v219_v36 = vpack.c.bf16 %v218_v35, %v217_v34 }
 0x134   :  { %296 = vmatmul.bf16.vlgmr.msra.gmra.mxu2 %v219_v36 }
 0x1b7   :  { %v297_v38 = vpop.f32.mrf.mxu2 }
 0x1b8   :  { %v298_v39 = vadd.f32 %v467_v37, %v297_v38 }
 0x1ba   :  { %v436_v40 = vmul.f32 -1.442695, %v298_v39 }
 0x1bc   :  { %468 = vpow2.f32 %v436_v40 }
 0x1bf   :  { %v299_v41 = vpop.f32.mrf.mxu2 }
 0x1c0   :  { %v300_v42 = vadd.f32 %v467_v37, %v299_v41 }
 0x1c2   :  { %v469_v43 = vpop.eup %468  ;;  %v437_v44 = vmul.f32 -1.442695, %v300_v42 }
 0x1c3   :  { %v308_v45 = vadd.f32 1.0, %v469_v43 }
 0x1c4   :  { %470 = vpow2.f32 %v437_v44 }
 0x1c5   :  { %472 = vrcp.f32 %v308_v45  ;;  %v321_v51 = vand.u32 2147483648, %v308_v45  ;;  %v319_v53 = vand.u32 2147483647, %v308_v45  ;;  %vm315_vm2 = vweird.f32 %v308_v45 }
 0x1c7   :  { %v322_v56 = vor.u32 1.1754944e-38, %v321_v51  ;;  %vm320_vm4 = vcmp.eq.f32.partialorder %v319_v53, 8.507059e+37 }
 0x1ca   :  { %v471_v46 = vpop.eup %470 }
 0x1cb   :  { %v473_v47 = vpop.eup %472  ;;  %v309_v48 = vadd.f32 1.0, %v471_v46 }
 0x1cc   :  { %v311_v49 = vmul.f32 %v473_v47, %v308_v45  ;;  %vm316_vm1 = vweird.f32 %v473_v47 }
 0x1cd   :  { %474 = vrcp.f32 %v309_v48  ;;  %vm317_vm3 = vmor %vm315_vm2, %vm316_vm1  ;;  %v336_v61 = vand.u32 2147483648, %v309_v48  ;;  %v334_v63 = vand.u32 2147483647, %v309_v48  ;;  %vm330_vm6 = vweird.f32 %v309_v48 }
 0x1ce   :  { %v312_v50 = vsub.f32 1.0, %v311_v49 }
 0x1cf   :  { %v337_v1 = vor.u32 1.1754944e-38, %v336_v61  ;;  %vm335_vm8 = vcmp.eq.f32.partialorder %v334_v63, 8.507059e+37 }
 0x1d0   :  { %v313_v52 = vmul.f32 %v473_v47, %v312_v50 }
 0x1d2   :  { %v314_v54 = vadd.f32 %v473_v47, %v313_v52 }
 0x1d3   :  { %v475_v55 = vpop.eup %474 }
 0x1d4   :  { %v326_v57 = vmul.f32 %v475_v55, %v309_v48  ;;  %v318_v58 = vsel %vm317_vm3, %v473_v47, %v314_v54  ;;  %vm331_vm5 = vweird.f32 %v475_v55 }
 0x1d5   :  { %v323_v59 = vsel %vm320_vm4, %v322_v56, %v318_v58  ;;  %vm332_vm7 = vmor %vm330_vm6, %vm331_vm5 }
 0x1d6   :  { %v327_v60 = vsub.f32 1.0, %v326_v57  ;;  %340 = vst [vmem:[#allocation10] sm:$0xff] %v323_v59 }
 0x1d8   :  { %v328_v62 = vmul.f32 %v475_v55, %v327_v60 }
 0x1da   :  { %v329_v0 = vadd.f32 %v475_v55, %v328_v62 }
 0x1dc   :  { %v333_v2 = vsel %vm332_vm7, %v475_v55, %v329_v0 }
 0x1dd   :  { %v338_v3 = vsel %vm335_vm8, %v337_v1, %v333_v2 }
 0x1de   :  { %341 = vst [vmem:[#allocation10 + $0x8] sm:$0xff] %v338_v3 }
 0x1df   :  { %354 = dma.vmem_to_hbm [thread:$0]  %s347_s6, 256, %s349_s28, [#allocation4], %s608_s13, %s608_s13, %s609_s14  }
 0x1e0   :  { %602 = dma.done.wait [#allocation4], 256  }
 0x1e1   :  { %603 = vsyncadd [#allocation4], 4294967040 }
 0x1e2   :  { %359 = vsyncpa [#allocation3], 1 }
 0x1e3   :  { %360 = vsyncpa [#allocation6], 1 }
 0x1e4   :  { %361 = vsyncpa [#allocation9], 1 }
 0x1e5   :  { %362 = vsyncpa [#allocation4], 1 }

// kernel: tpu_custom_call.1
= control target key start
LH: loop header
LB: loop body
LE: loop exit
PB: predicated region body
PF: predicated region fallthrough
CT: control target
= control target key end

     0   :  { %12 = vsyncpa [#allocation3], 0  ;;  %s683_s0 = inlined_call_operand.hbm [shape: f32[16,32], index: 0, kind: input, shape index: {}]   ;;  %s684_s1 = inlined_call_operand.hbm [shape: bf16[32,128], index: 1, kind: input, shape index: {}]   ;;  %s685_s2 = inlined_call_operand.vmem [shape: f32[1,128], index: 2, kind: input, shape index: {}]   ;;  %s686_s3 = inlined_call_operand.hbm [shape: bf16[128,128], index: 3, kind: input, shape index: {}]   ;;  %s687_s4 = inlined_call_operand.vmem [shape: f32[1,128], index: 4, kind: input, shape index: {}]   ;;  %s688_s5 = inlined_call_operand.hbm [shape: bf16[128,128], index: 5, kind: input, shape index: {}]   ;;  %s689_s6 = inlined_call_operand.vmem [shape: f32[1,128], index: 6, kind: input, shape index: {}]   ;;  %s690_s7 = inlined_call_operand.hbm [shape: f32[16,128], index: 7, kind: output, shape index: {}]  }
   0x1   :  { %13 = vsyncpa [#allocation6], 0 }
   0x2   :  { %14 = vsyncpa [#allocation9], 0  ;;  %s33_s26 = sshll.u32 %s684_s1, 4  ;;  %s34_s26 = int_to_ptr.hbm [resolvable:$true] %s33_s26 }
   0x3   :  { %15 = vsyncpa [#allocation4], 0  ;;  %s604_s27 = smov [#allocation5]   ;;  %s20_s8 = sshll.u32 %s683_s0, 4  ;;  %s21_s8 = int_to_ptr.hbm [resolvable:$true] %s20_s8 }
   0x4   :  { %s35_s28 = sshll.u32 %s604_s27, 4  ;;  %s605_s9 = smov 64   ;;  %s36_s28 = int_to_ptr.vmem [resolvable:$true] %s35_s28 }
   0x5   :  { %s606_s10 = smov 4   ;;  %s607_s11 = smov [#allocation2]  }
   0x6   :  { %41 = dma.hbm_to_vmem [thread:$0]  %s34_s26, 256, %s36_s28, [#allocation6], %s605_s9, %s605_s9, %s606_s10  }
   0x7   :  { %s22_s12 = sshll.u32 %s607_s11, 4  ;;  %s608_s13 = smov 128   ;;  %s23_s12 = int_to_ptr.vmem [resolvable:$true] %s22_s12 }
   0x8   :  { %s609_s14 = smov 8   ;;  %s48_s16 = sshll.u32 %s686_s3, 4  ;;  %s49_s16 = int_to_ptr.hbm [resolvable:$true] %s48_s16 }
   0x9   :  { %28 = dma.hbm_to_vmem [thread:$0]  %s21_s8, 256, %s23_s12, [#allocation3], %s608_s13, %s608_s13, %s609_s14  }
   0xa   :  { %s610_s17 = smov [#allocation7]   ;;  %s63_s20 = sshll.u32 %s688_s5, 4  ;;  %s64_s20 = int_to_ptr.hbm [resolvable:$true] %s63_s20 }
   0xb   :  { %s50_s0 = sshll.u32 %s610_s17, 4  ;;  %s611_s21 = smov [#allocation8]   ;;  %s51_s0 = int_to_ptr.vmem [resolvable:$true] %s50_s0 }
   0xc   :  { %56 = dma.hbm_to_vmem [thread:$0]  %s49_s16, 1024, %s51_s0, [#allocation6], %s605_s9, %s605_s9, %s606_s10  }
   0xd   :  { %s65_s22 = sshll.u32 %s611_s21, 4  ;;  %s66_s22 = int_to_ptr.vmem [resolvable:$true] %s65_s22 }
   0xe   :  { %71 = dma.hbm_to_vmem [thread:$0]  %s64_s20, 1024, %s66_s22, [#allocation9], %s605_s9, %s605_s9, %s606_s10  }
   0xf   :  { %596 = dma.done.wait [#allocation3], 256  }
  0x10   :  { %597 = vsyncadd [#allocation3], 4294967040 }
  0x11   :  { %598 = dma.done.wait [#allocation6], 1280  }
  0x12   :  { %599 = vsyncadd [#allocation6], 4294966016 }
  0x13   :  { %600 = dma.done.wait [#allocation9], 1024  }
  0x14   :  { %601 = vsyncadd [#allocation9], 4294966272  ;;  %v439_v0 = vld [vmem:[#allocation5 + $0x8] sm:$0xff]  ;;  %v438_v1 = vld [vmem:[#allocation5] sm:$0xff]  ;;  %vm114_vm0 = vcmask 261120   ;;  %s348_s28 = sshll.u32 %s690_s7, 4  ;;  %s349_s28 = int_to_ptr.hbm [resolvable:$true] %s348_s28 }
  0x15   :  { %v447_v2 = vld [vmem:[#allocation7 + $0x38] sm:$0xff]  ;;  %124 = vmatpush.bf16.msra.mxu0 %v439_v0  ;;  %v91_v3 = vld [vmem:[#allocation2] sm:$0xff]  ;;  %v92_v4 = vld [vmem:[#allocation2 + $0x8] sm:$0xff] }
  0x16   :  { %203 = vmatpush.bf16.msra.mxu1 %v447_v2  ;;  %v446_v5 = vld [vmem:[#allocation7 + $0x30] sm:$0xff]  ;;  %v93_v6 = vpack.c.bf16 %v92_v4, %v91_v3  ;;  %v445_v7 = vld [vmem:[#allocation7 + $0x28] sm:$0xff]  ;;  %v444_v8 = vld [vmem:[#allocation7 + $0x20] sm:$0xff] }
  0x17   :  { %v443_v9 = vld [vmem:[#allocation7 + $0x18] sm:$0xff]  ;;  %v442_v10 = vld [vmem:[#allocation7 + $0x10] sm:$0xff]  ;;  %v441_v11 = vld [vmem:[#allocation7 + $0x8] sm:$0xff] }
  0x18   :  { %v440_v12 = vld [vmem:[#allocation7] sm:$0xff]  ;;  %v455_v13 = vld [vmem:[#allocation8 + $0x38] sm:$0xff]  ;;  %v454_v14 = vld [vmem:[#allocation8 + $0x30] sm:$0xff] }
  0x19   :  { %125 = vmatpush.bf16.msra.mxu0 %v438_v1  ;;  %288 = vmatpush.bf16.msra.mxu2 %v455_v13  ;;  %v453_v15 = vld [vmem:[#allocation8 + $0x28] sm:$0xff]  ;;  %v452_v16 = vld [vmem:[#allocation8 + $0x20] sm:$0xff]  ;;  %v451_v25 = vld [vmem:[#allocation8 + $0x18] sm:$0xff] }
  0x1a   :  { %204 = vmatpush.bf16.msra.mxu1 %v446_v5  ;;  %v465_v18 = vld [vmem:[%s685_s2] ss:$0 sm:$0xff]  ;;  %v450_v26 = vld [vmem:[#allocation8 + $0x10] sm:$0xff]  ;;  %v449_v27 = vld [vmem:[#allocation8 + $0x8] sm:$0xff] }
  0x1b   :  { %v448_v28 = vld [vmem:[#allocation8] sm:$0xff] }
  0x1c   :  { %371 = vmatmul.msk.bf16.vlgmr.msra.gmra.mxu0 %vm114_vm0, %v93_v6  ;;  %v466_v30 = vld [vmem:[%s687_s4] ss:$0 sm:$0xff]  ;;  %s612_s4 = smov [#allocation10]  }
  0x1d   :  { %289 = vmatpush.bf16.msra.mxu2 %v454_v14  ;;  %v467_v37 = vld [vmem:[%s689_s6] ss:$0 sm:$0xff]  ;;  %s346_s6 = sshll.u32 %s612_s4, 4  ;;  %s347_s6 = int_to_ptr.vmem [resolvable:$true] %s346_s6 }
  0x1e   :  { %205 = vmatpush.bf16.msra.mxu1 %v445_v7 }
  0x21   :  { %290 = vmatpush.bf16.msra.mxu2 %v453_v15 }
  0x22   :  { %206 = vmatpush.bf16.msra.mxu1 %v444_v8 }
  0x25   :  { %291 = vmatpush.bf16.msra.mxu2 %v452_v16 }
  0x26   :  { %207 = vmatpush.bf16.msra.mxu1 %v443_v9 }
  0x29   :  { %292 = vmatpush.bf16.msra.mxu2 %v451_v25 }
  0x2a   :  { %208 = vmatpush.bf16.msra.mxu1 %v442_v10 }
  0x2d   :  { %293 = vmatpush.bf16.msra.mxu2 %v450_v26 }
  0x2e   :  { %209 = vmatpush.bf16.msra.mxu1 %v441_v11 }
  0x31   :  { %294 = vmatpush.bf16.msra.mxu2 %v449_v27 }
  0x32   :  { %210 = vmatpush.bf16.msra.mxu1 %v440_v12 }
  0x35   :  { %295 = vmatpush.bf16.msra.mxu2 %v448_v28 }
  0x99   :  { %v127_v17 = vpop.f32.mrf.mxu0 }
  0x9a   :  { %v128_v19 = vadd.f32 %v465_v18, %v127_v17 }
  0x9c   :  { %v132_v22 = vmax.f32 %v128_v19, 0.0 }
  0xa1   :  { %v129_v20 = vpop.f32.mrf.mxu0 }
  0xa2   :  { %v130_v21 = vadd.f32 %v465_v18, %v129_v20 }
  0xa4   :  { %v133_v23 = vmax.f32 %v130_v21, 0.0 }
  0xa6   :  { %v134_v24 = vpack.c.bf16 %v133_v23, %v132_v22 }
  0xa8   :  { %211 = vmatmul.bf16.vlgmr.msra.gmra.mxu1 %v134_v24 }
 0x125   :  { %v212_v29 = vpop.f32.mrf.mxu1 }
 0x126   :  { %v213_v31 = vadd.f32 %v466_v30, %v212_v29 }
 0x128   :  { %v217_v34 = vmax.f32 %v213_v31, 0.0 }
 0x12d   :  { %v214_v32 = vpop.f32.mrf.mxu1 }
 0x12e   :  { %v215_v33 = vadd.f32 %v466_v30, %v214_v32 }
 0x130   :  { %v218_v35 = vmax.f32 %v215_v33, 0.0 }
 0x132   :  { %v219_v36 = vpack.c.bf16 %v218_v35, %v217_v34 }
 0x134   :  { %296 = vmatmul.bf16.vlgmr.msra.gmra.mxu2 %v219_v36 }
 0x1b7   :  { %v297_v38 = vpop.f32.mrf.mxu2 }
 0x1b8   :  { %v298_v39 = vadd.f32 %v467_v37, %v297_v38 }
 0x1ba   :  { %v436_v40 = vmul.f32 -1.442695, %v298_v39 }
 0x1bc   :  { %468 = vpow2.f32 %v436_v40 }
 0x1bf   :  { %v299_v41 = vpop.f32.mrf.mxu2 }
 0x1c0   :  { %v300_v42 = vadd.f32 %v467_v37, %v299_v41 }
 0x1c2   :  { %v469_v43 = vpop.eup %468  ;;  %v437_v44 = vmul.f32 -1.442695, %v300_v42 }
 0x1c3   :  { %v308_v45 = vadd.f32 1.0, %v469_v43 }
 0x1c4   :  { %470 = vpow2.f32 %v437_v44 }
 0x1c5   :  { %472 = vrcp.f32 %v308_v45  ;;  %v321_v51 = vand.u32 2147483648, %v308_v45  ;;  %v319_v53 = vand.u32 2147483647, %v308_v45  ;;  %vm315_vm2 = vweird.f32 %v308_v45 }
 0x1c7   :  { %v322_v56 = vor.u32 1.1754944e-38, %v321_v51  ;;  %vm320_vm4 = vcmp.eq.f32.partialorder %v319_v53, 8.507059e+37 }
 0x1ca   :  { %v471_v46 = vpop.eup %470 }
 0x1cb   :  { %v473_v47 = vpop.eup %472  ;;  %v309_v48 = vadd.f32 1.0, %v471_v46 }
 0x1cc   :  { %v311_v49 = vmul.f32 %v473_v47, %v308_v45  ;;  %vm316_vm1 = vweird.f32 %v473_v47 }
 0x1cd   :  { %474 = vrcp.f32 %v309_v48  ;;  %vm317_vm3 = vmor %vm315_vm2, %vm316_vm1  ;;  %v336_v61 = vand.u32 2147483648, %v309_v48  ;;  %v334_v63 = vand.u32 2147483647, %v309_v48  ;;  %vm330_vm6 = vweird.f32 %v309_v48 }
 0x1ce   :  { %v312_v50 = vsub.f32 1.0, %v311_v49 }
 0x1cf   :  { %v337_v1 = vor.u32 1.1754944e-38, %v336_v61  ;;  %vm335_vm8 = vcmp.eq.f32.partialorder %v334_v63, 8.507059e+37 }
 0x1d0   :  { %v313_v52 = vmul.f32 %v473_v47, %v312_v50 }
 0x1d2   :  { %v314_v54 = vadd.f32 %v473_v47, %v313_v52 }
 0x1d3   :  { %v475_v55 = vpop.eup %474 }
 0x1d4   :  { %v326_v57 = vmul.f32 %v475_v55, %v309_v48  ;;  %v318_v58 = vsel %vm317_vm3, %v473_v47, %v314_v54  ;;  %vm331_vm5 = vweird.f32 %v475_v55 }
 0x1d5   :  { %v323_v59 = vsel %vm320_vm4, %v322_v56, %v318_v58  ;;  %vm332_vm7 = vmor %vm330_vm6, %vm331_vm5 }
 0x1d6   :  { %v327_v60 = vsub.f32 1.0, %v326_v57  ;;  %340 = vst [vmem:[#allocation10] sm:$0xff] %v323_v59 }
 0x1d8   :  { %v328_v62 = vmul.f32 %v475_v55, %v327_v60 }
 0x1da   :  { %v329_v0 = vadd.f32 %v475_v55, %v328_v62 }
 0x1dc   :  { %v333_v2 = vsel %vm332_vm7, %v475_v55, %v329_v0 }
 0x1dd   :  { %v338_v3 = vsel %vm335_vm8, %v337_v1, %v333_v2 }
 0x1de   :  { %341 = vst [vmem:[#allocation10 + $0x8] sm:$0xff] %v338_v3 }
 0x1df   :  { %354 = dma.vmem_to_hbm [thread:$0]  %s347_s6, 256, %s349_s28, [#allocation4], %s608_s13, %s608_s13, %s609_s14  }
 0x1e0   :  { %602 = dma.done.wait [#allocation4], 256  }
 0x1e1   :  { %603 = vsyncadd [#allocation4], 4294967040 }
 0x1e2   :  { %359 = vsyncpa [#allocation3], 1 }
 0x1e3   :  { %360 = vsyncpa [#allocation6], 1 }
 0x1e4   :  { %361 = vsyncpa [#allocation9], 1 }
 0x1e5   :  { %362 = vsyncpa [#allocation4], 1 }

</bundles_post_ra>
